<compile_context>
chip_gen: v7x
topology: tpu7x:2x2x1
jax: 0.10.0
libtpu: 0.0.40
codegen_flags: <defaults>
</compile_context>

<pallas_src>
import math

import numpy as np
import jax
import jax.numpy as jnp
from jax.experimental import pallas as pl
from jax.experimental.pallas import tpu as pltpu


# ------------------------------------------------ gaussian kernel (host side) --

def _gkern1d(kernlen=31, nsig=4):
    """1-D probability increments used by gkern (scipy-free norm.cdf via erf)."""
    interval = (2.0 * nsig + 1.0) / kernlen
    xs = np.linspace(-nsig - interval / 2.0, nsig + interval / 2.0, kernlen + 1)
    cdf = np.array([0.5 * (1.0 + math.erf(v / math.sqrt(2.0))) for v in xs],
                   dtype=np.float64)
    return np.diff(cdf)


def _separable_factor(kernlen=31, nsig=4):
    """gkern(kernlen, nsig) == outer(a, a) with a = sqrt(kern1d)/sum(sqrt(kern1d))."""
    k1d = _gkern1d(kernlen, nsig)
    a = np.sqrt(k1d)
    return (a / a.sum()).astype(np.float64)


def _band_matrix(n, a):
    """M[i, j] = a[j - i + R] inside the band, 0 outside -> 'same' 1-D conv matrix."""
    klen = len(a)
    r = klen // 2
    idx = np.arange(n)
    off = idx[None, :] - idx[:, None] + r
    valid = (off >= 0) & (off < klen)
    m = np.where(valid, np.take(a, np.clip(off, 0, klen - 1)), 0.0)
    return m.astype(np.float32)


# ------------------------------------------------------------------- kernels --

def _gate_kernel(att_ref, mh_ref, mwt_ref, gate_ref):
    # att_ref: (1, H, W)  mh_ref: (H, H)  mwt_ref: (W, W)  gate_ref: (1, H, W)
    att = att_ref[0].astype(jnp.float32)
    # separable 31x31 gaussian conv (padding=15) as two MXU matmuls
    tmp = jnp.dot(mh_ref[...], att, preferred_element_type=jnp.float32)
    soft = jnp.dot(tmp, mwt_ref[...], preferred_element_type=jnp.float32)
    mn = jnp.min(soft, keepdims=True)
    mx = jnp.max(soft, keepdims=True)
    soft_n = (soft - mn) / (mx - mn + 1e-8)               # min_max_norm
    gate_ref[0] = jnp.maximum(soft_n, att).astype(gate_ref.dtype)


def _soft_kernel(att_ref, mh_ref, mwt_ref, o_ref):
    # HA_out=True path: just the normalised soft attention.
    att = att_ref[0].astype(jnp.float32)
    tmp = jnp.dot(mh_ref[...], att, preferred_element_type=jnp.float32)
    soft = jnp.dot(tmp, mwt_ref[...], preferred_element_type=jnp.float32)
    mn = jnp.min(soft, keepdims=True)
    mx = jnp.max(soft, keepdims=True)
    o_ref[0] = ((soft - mn) / (mx - mn + 1e-8)).astype(o_ref.dtype)


def _mul_kernel(gate_ref, x_ref, o_ref):
    # gate_ref: (1, 1, HW)  x_ref: (1, ct, HW)  o_ref: (1, ct, HW)
    # Lane-dense last dim (HW) -> unmasked vld/vst in the HBM-bound multiply.
    o_ref[0] = (x_ref[0] * gate_ref[0]).astype(o_ref.dtype)


# ------------------------------------------------------------------ wrappers --

def _pick_channel_tile(channels, hw, itemsize, block_budget_bytes=4 << 20):
    """Channel tile: full C if it fits the per-block budget, else a multiple of 8
    (keeps the (8,128) tiling rule valid when ct < C and C is not divisible)."""
    per_ch = max(1, hw * itemsize)
    max_ct = max(1, block_budget_bytes // per_ch)
    if channels <= max_ct:
        return channels
    return max(8, (max_ct // 8) * 8)


def ha_forward(attention, x=None, ha_out=False, kernlen=31, nsig=4):
    """Pallas HA forward.  attention: (B,1,H,W); x: (B,C,H,W); NCHW."""
    B, cab, H, W = attention.shape
    assert cab == 1, "HA expects a single-channel attention map"
    a = _separable_factor(kernlen, nsig)
    mh = jnp.asarray(_band_matrix(H, a))          # (H, H)
    mwt = jnp.asarray(_band_matrix(W, a).T)       # (W, W)
    att = attention.reshape(B, H, W)

    if ha_out:
        soft = pl.pallas_call(
            _soft_kernel,
            out_shape=jax.ShapeDtypeStruct((B, H, W), attention.dtype),
            grid=(B,),
            in_specs=[
                pl.BlockSpec((1, H, W), lambda b: (b, 0, 0)),
                pl.BlockSpec((H, H), lambda b: (0, 0)),
                pl.BlockSpec((W, W), lambda b: (0, 0)),
            ],
            out_specs=pl.BlockSpec((1, H, W), lambda b: (b, 0, 0)),
            compiler_params=pltpu.CompilerParams(
                dimension_semantics=("parallel",)),
        )(att, mh, mwt)
        return soft.reshape(B, 1, H, W)

    Bx, C, Hx, Wx = x.shape
    assert (Bx, Hx, Wx) == (B, H, W)
    hw = H * W

    # ---- Stage 1: per-batch gate (tiny MXU + VPU work, once per batch). ----
    # mh/mwt index maps are constant -> not re-DMA'd across grid steps.
    gate = pl.pallas_call(
        _gate_kernel,
        out_shape=jax.ShapeDtypeStruct((B, H, W), x.dtype),
        grid=(B,),
        in_specs=[
            pl.BlockSpec((1, H, W), lambda b: (b, 0, 0)),
            pl.BlockSpec((H, H), lambda b: (0, 0)),
            pl.BlockSpec((W, W), lambda b: (0, 0)),
        ],
        out_specs=pl.BlockSpec((1, H, W), lambda b: (b, 0, 0)),
        compiler_params=pltpu.CompilerParams(
            dimension_semantics=("parallel",)),
    )(att, mh, mwt)

    # ---- Stage 2: HBM-bound broadcast multiply, lane-dense (last dim = H*W). --
    # Free metadata reshapes (contiguous collapse of trailing dims).
    gate_flat = gate.reshape(B, 1, hw)
    x_flat = x.reshape(B, C, hw)

    itemsize = int(np.dtype(x.dtype).itemsize)
    ct = _pick_channel_tile(C, hw, itemsize)
    n_ct = pl.cdiv(C, ct)

    # Real double-buffered footprint: 2x(x block) + 2x(out block) + 2x(gate) + slack.
    footprint = 4 * ct * hw * itemsize + 2 * hw * itemsize + (1 << 20)
    vmem_limit = int(min(max(footprint, 32 << 20), 48 << 20))

    out_flat = pl.pallas_call(
        _mul_kernel,
        out_shape=jax.ShapeDtypeStruct((B, C, hw), x.dtype),
        grid=(B, n_ct),
        in_specs=[
            pl.BlockSpec((1, 1, hw), lambda b, c: (b, 0, 0)),
            pl.BlockSpec((1, ct, hw), lambda b, c: (b, c, 0)),
        ],
        out_specs=pl.BlockSpec((1, ct, hw), lambda b, c: (b, c, 0)),
        compiler_params=pltpu.CompilerParams(
            dimension_semantics=("parallel", "parallel"),
            vmem_limit_bytes=vmem_limit),
    )(gate_flat, x_flat)
    return out_flat.reshape(B, C, H, W)


# ----------------------------------------------------------------- reference --

def ha_reference(attention, x, kernlen=31, nsig=4):
    """Pure-JAX reference (same separable math, HIGHEST matmul precision)."""
    B, _, H, W = attention.shape
    a = _separable_factor(kernlen, nsig)
    mh = jnp.asarray(_band_matrix(H, a))
    mwt = jnp.asarray(_band_matrix(W, a).T)
    att = attention[:, 0]
    tmp = jnp.einsum("ij,bjk->bik", mh, att,
                     precision=jax.lax.Precision.HIGHEST)
    soft = jnp.einsum("bij,jk->bik", tmp, mwt,
                      precision=jax.lax.Precision.HIGHEST)
    mn = soft.min(axis=(1, 2), keepdims=True)
    mx = soft.max(axis=(1, 2), keepdims=True)
    soft_n = (soft - mn) / (mx - mn + 1e-8)
    gate = jnp.maximum(soft_n, att)
    return x * gate[:, None, :, :], soft_n[:, None, :, :]


# --------------------------------------------------------------------- main --

if __name__ == "__main__":
    # sanity: gkern(31, 4) really is outer(a, a) (exact separability)
    k1d = _gkern1d(31, 4)
    k_full = np.sqrt(np.outer(k1d, k1d))
    k_full = k_full / k_full.sum()
    a_fac = _separable_factor(31, 4)
    assert np.allclose(k_full, np.outer(a_fac, a_fac), atol=1e-10)

    key = jax.random.PRNGKey(0)
    ka, kx = jax.random.split(key)
    B, C, H, W = 2, 4, 32, 32
    attention = jax.random.normal(ka, (B, 1, H, W), jnp.float32)
    x = jax.random.normal(kx, (B, C, H, W), jnp.float32)

    out = jax.jit(ha_forward)(attention, x)
    jax.block_until_ready(out)
    assert out.shape == (B, C, H, W), out.shape
    assert bool(jnp.all(jnp.isfinite(out)))

    ref_out, ref_soft = ha_reference(attention, x)
    np.testing.assert_allclose(np.asarray(out), np.asarray(ref_out),
                               rtol=1e-2, atol=1e-2)

    # HA_out=True path
    soft = jax.jit(lambda a: ha_forward(a, ha_out=True))(attention)
    jax.block_until_ready(soft)
    assert soft.shape == (B, 1, H, W), soft.shape
    np.testing.assert_allclose(np.asarray(soft), np.asarray(ref_soft),
                               rtol=1e-2, atol=1e-2)

    print("KERNEL_OK")
</pallas_src>

<mosaic_0001>
module attributes {stable_mosaic.version = 11 : i64} {
  func.func @_gate_kernel(%arg0: i32, %arg1: memref<1x32x32xf32, #tpu.memory_space<vmem>>, %arg2: memref<32x32xf32, #tpu.memory_space<vmem>>, %arg3: memref<32x32xf32, #tpu.memory_space<vmem>>, %arg4: memref<1x32x32xf32, #tpu.memory_space<vmem>>) attributes {dimension_semantics = [#tpu.dimension_semantics<parallel>], iteration_bounds = array<i64: 2>, scalar_prefetch = 0 : i64, scratch_operands = 0 : i64, tpu.core_type = #tpu.core_type<tc>, window_params = [{transform_indices = @transform_0, window_bounds = array<i64: 1, 32, 32>}, {pipeline_mode = #tpu.pipeline_mode<synchronous>, transform_indices = @transform_1, window_bounds = array<i64: 32, 32>}, {pipeline_mode = #tpu.pipeline_mode<synchronous>, transform_indices = @transform_2, window_bounds = array<i64: 32, 32>}, {transform_indices = @transform_3, window_bounds = array<i64: 1, 32, 32>}]} {
    %c0 = arith.constant 0 : index
    %c0_0 = arith.constant 0 : index
    %c0_1 = arith.constant 0 : index
    %0 = vector.load %arg1[%c0, %c0_0, %c0_1] : memref<1x32x32xf32, #tpu.memory_space<vmem>>, vector<1x32x32xf32>
    %1 = vector.shape_cast %0 : vector<1x32x32xf32> to vector<32x32xf32>
    %c0_2 = arith.constant 0 : index
    %c0_3 = arith.constant 0 : index
    %2 = vector.load %arg2[%c0_2, %c0_3] : memref<32x32xf32, #tpu.memory_space<vmem>>, vector<32x32xf32>
    %cst = arith.constant dense<0.000000e+00> : vector<32x32xf32>
    %3 = tpu.matmul %2, %1, %cst {dimension_numbers = #tpu.dot_dimension_numbers<[1], [0], [0], [1], [0, 0, 1, 1], [], []>} : vector<32x32xf32>, vector<32x32xf32>, vector<32x32xf32> -> vector<32x32xf32>
    %c0_4 = arith.constant 0 : index
    %c0_5 = arith.constant 0 : index
    %4 = vector.load %arg3[%c0_4, %c0_5] : memref<32x32xf32, #tpu.memory_space<vmem>>, vector<32x32xf32>
    %cst_6 = arith.constant dense<0.000000e+00> : vector<32x32xf32>
    %5 = tpu.matmul %3, %4, %cst_6 {dimension_numbers = #tpu.dot_dimension_numbers<[1], [0], [0], [1], [0, 0, 1, 1], [], []>} : vector<32x32xf32>, vector<32x32xf32>, vector<32x32xf32> -> vector<32x32xf32>
    %6 = vector.shape_cast %5 : vector<32x32xf32> to vector<1x32x32xf32>
    %cst_7 = arith.constant dense<0x7F800000> : vector<1xf32>
    %7 = vector.multi_reduction <minimumf>, %6, %cst_7 [1, 2] : vector<1x32x32xf32> to vector<1xf32>
    %8 = vector.shape_cast %7 : vector<1xf32> to vector<1x1x1xf32>
    %9 = vector.extract %8[0, 0, 0] : f32 from vector<1x1x1xf32>
    %10 = vector.broadcast %9 : f32 to vector<1x1xf32>
    %11 = vector.shape_cast %5 : vector<32x32xf32> to vector<1x32x32xf32>
    %cst_8 = arith.constant dense<0xFF800000> : vector<1xf32>
    %12 = vector.multi_reduction <maximumf>, %11, %cst_8 [1, 2] : vector<1x32x32xf32> to vector<1xf32>
    %13 = vector.shape_cast %12 : vector<1xf32> to vector<1x1x1xf32>
    %14 = vector.extract %13[0, 0, 0] : f32 from vector<1x1x1xf32>
    %15 = vector.broadcast %14 : f32 to vector<1x1xf32>
    %16 = vector.broadcast %10 : vector<1x1xf32> to vector<32x32xf32>
    %17 = arith.subf %5, %16 : vector<32x32xf32>
    %18 = arith.subf %15, %10 : vector<1x1xf32>
    %cst_9 = arith.constant 9.99999993E-9 : f32
    %19 = vector.broadcast %cst_9 : f32 to vector<1x1xf32>
    %20 = arith.addf %18, %19 : vector<1x1xf32>
    %21 = vector.broadcast %20 : vector<1x1xf32> to vector<32x32xf32>
    %22 = arith.divf %17, %21 : vector<32x32xf32>
    %23 = arith.maximumf %22, %1 : vector<32x32xf32>
    %c0_10 = arith.constant 0 : index
    %c0_11 = arith.constant 0 : index
    %c0_12 = arith.constant 0 : index
    %24 = vector.load %arg4[%c0_10, %c0_11, %c0_12] : memref<1x32x32xf32, #tpu.memory_space<vmem>>, vector<1x32x32xf32>
    %25 = vector.shape_cast %24 : vector<1x32x32xf32> to vector<32x32xf32>
    %26 = vector.shape_cast %23 : vector<32x32xf32> to vector<1x32x32xf32>
    tpu.vector_store %arg4[%c0_10, %c0_11, %c0_12], %26 {strides = array<i32>} : memref<1x32x32xf32, #tpu.memory_space<vmem>>, vector<1x32x32xf32>,
    return
  }
  func.func @transform_0(%arg0: i32) -> (i32, i32, i32) {
    %c0_i32 = arith.constant 0 : i32
    %c0_i32_0 = arith.constant 0 : i32
    %c0_i32_1 = arith.constant 0 : i32
    return %arg0, %c0_i32, %c0_i32_0 : i32, i32, i32
  }
  func.func @transform_1(%arg0: i32) -> (i32, i32) {
    %c0_i32 = arith.constant 0 : i32
    %c0_i32_0 = arith.constant 0 : i32
    %c0_i32_1 = arith.constant 0 : i32
    return %c0_i32, %c0_i32_0 : i32, i32
  }
  func.func @transform_2(%arg0: i32) -> (i32, i32) {
    %c0_i32 = arith.constant 0 : i32
    %c0_i32_0 = arith.constant 0 : i32
    %c0_i32_1 = arith.constant 0 : i32
    return %c0_i32, %c0_i32_0 : i32, i32
  }
  func.func @transform_3(%arg0: i32) -> (i32, i32, i32) {
    %c0_i32 = arith.constant 0 : i32
    %c0_i32_0 = arith.constant 0 : i32
    %c0_i32_1 = arith.constant 0 : i32
    return %arg0, %c0_i32, %c0_i32_0 : i32, i32, i32
  }
}

module attributes {stable_mosaic.version = 11 : i64} {
  func.func @_mul_kernel(%arg0: i32, %arg1: i32, %arg2: memref<1x1x1024xf32, #tpu.memory_space<vmem>>, %arg3: memref<1x4x1024xf32, #tpu.memory_space<vmem>>, %arg4: memref<1x4x1024xf32, #tpu.memory_space<vmem>>) attributes {dimension_semantics = [#tpu.dimension_semantics<parallel>, #tpu.dimension_semantics<parallel>], iteration_bounds = array<i64: 2, 1>, scalar_prefetch = 0 : i64, scratch_operands = 0 : i64, tpu.core_type = #tpu.core_type<tc>, window_params = [{transform_indices = @transform_0, window_bounds = array<i64: 1, 1, 1024>}, {transform_indices = @transform_1, window_bounds = array<i64: 1, 4, 1024>}, {transform_indices = @transform_2, window_bounds = array<i64: 1, 4, 1024>}]} {
    %c0 = arith.constant 0 : index
    %c0_0 = arith.constant 0 : index
    %c0_1 = arith.constant 0 : index
    %0 = vector.load %arg3[%c0, %c0_0, %c0_1] : memref<1x4x1024xf32, #tpu.memory_space<vmem>>, vector<1x4x1024xf32>
    %1 = vector.shape_cast %0 : vector<1x4x1024xf32> to vector<4x1024xf32>
    %c0_2 = arith.constant 0 : index
    %c0_3 = arith.constant 0 : index
    %c0_4 = arith.constant 0 : index
    %2 = vector.load %arg2[%c0_2, %c0_3, %c0_4] : memref<1x1x1024xf32, #tpu.memory_space<vmem>>, vector<1x1x1024xf32>
    %3 = vector.shape_cast %2 : vector<1x1x1024xf32> to vector<1x1024xf32>
    %4 = vector.broadcast %3 : vector<1x1024xf32> to vector<4x1024xf32>
    %5 = arith.mulf %1, %4 : vector<4x1024xf32>
    %c0_5 = arith.constant 0 : index
    %c0_6 = arith.constant 0 : index
    %c0_7 = arith.constant 0 : index
    %6 = vector.load %arg4[%c0_5, %c0_6, %c0_7] : memref<1x4x1024xf32, #tpu.memory_space<vmem>>, vector<1x4x1024xf32>
    %7 = vector.shape_cast %6 : vector<1x4x1024xf32> to vector<4x1024xf32>
    %8 = vector.shape_cast %5 : vector<4x1024xf32> to vector<1x4x1024xf32>
    tpu.vector_store %arg4[%c0_5, %c0_6, %c0_7], %8 {strides = array<i32>} : memref<1x4x1024xf32, #tpu.memory_space<vmem>>, vector<1x4x1024xf32>,
    return
  }
  func.func @transform_0(%arg0: i32, %arg1: i32) -> (i32, i32, i32) {
    %c0_i32 = arith.constant 0 : i32
    %c0_i32_0 = arith.constant 0 : i32
    %c0_i32_1 = arith.constant 0 : i32
    return %arg0, %c0_i32, %c0_i32_0 : i32, i32, i32
  }
  func.func @transform_1(%arg0: i32, %arg1: i32) -> (i32, i32, i32) {
    %c0_i32 = arith.constant 0 : i32
    %c0_i32_0 = arith.constant 0 : i32
    return %arg0, %arg1, %c0_i32 : i32, i32, i32
  }
  func.func @transform_2(%arg0: i32, %arg1: i32) -> (i32, i32, i32) {
    %c0_i32 = arith.constant 0 : i32
    %c0_i32_0 = arith.constant 0 : i32
    return %arg0, %arg1, %c0_i32 : i32, i32, i32
  }
}

</mosaic_0001>

<bundles_post_ra>
// kernel: ha_forward.3
= control target key start
LH: loop header
LB: loop body
LE: loop exit
PB: predicated region body
PF: predicated region fallthrough
CT: control target
= control target key end

     0   :  { %s432_s9 = smov 0   ;;  %s434_s10 = smov 0   ;;  %s472_s0 = inlined_call_operand.vmem [shape: f32[2,1,1024], index: 0, kind: input, shape index: {}]   ;;  %s473_s1 = inlined_call_operand.vmem [shape: f32[2,4,1024], index: 1, kind: input, shape index: {}]   ;;  %s474_s2 = inlined_call_operand.vmem [shape: f32[2,4,1024], index: 2, kind: output, shape index: {}]  }
   0x1   :  { %s436_s11 = smov 0  }
   0x2 LB: > { %s24_s12 = sadd.s32 1, %s411_s10  ;;  %p359_p0 = scmp.ge.s32.totalorder %s415_s11, 1  ;;  %s415_s11 = sphi %s436_s11, %s12_s11   ;;  %s411_s10 = sphi %s434_s10, %s476_s10   ;;  %s407_s9 = sphi %s432_s9, %s475_s9  }
   0x3   : > { %p26_p1 = scmp.ge.s32.totalorder %s24_s12, 2  ;;  %p141_p2 = scmp.lt.s32.totalorder %s415_s11, 3 }
   0x5   : > { %s478_s12 = smov (%p26_p1, %s24_s12), 0  ;;  %p142_p3 = pnand %p359_p0, %p141_p2 }
   0x6   : > { %p175_p4 = scmp.lt.s32.totalorder (!%p142_p3), %s407_s9, 1  ;;  %v203_v0 = vlaneseq (!%p142_p3) }
   0x7   : > { %145 = sbr.rel (%p142_p3) target bundleno = 26 (0x1a), region = 28 }
   0x8   : > { %v204_v1 = vshrl.u32 (!%p142_p3), %v203_v0, 7 }
   0xa   : > { %v205_v2 = vsub.s32 (!%p142_p3), 0, %v204_v1  ;;  %v209_v3 = vsub.s32 (!%p142_p3), 1, %v204_v1  ;;  %v213_v4 = vsub.s32 (!%p142_p3), 2, %v204_v1  ;;  %v217_v5 = vsub.s32 (!%p142_p3), 3, %v204_v1 }
   0xb   : > { %v221_v6 = vsub.s32 (!%p142_p3), 4, %v204_v1  ;;  %v225_v7 = vsub.s32 (!%p142_p3), 5, %v204_v1  ;;  %v229_v8 = vsub.s32 (!%p142_p3), 6, %v204_v1  ;;  %v233_v9 = vsub.s32 (!%p142_p3), 7, %v204_v1 }
   0xe   : > { %s480_s9 = smov (!%p175_p4, %s407_s9), 1 }
   0xf   : > { %s360_s13 = sshll.u32 %s480_s9, 3  ;;  %s367_s14 = sshll.u32 %s480_s9, 5 }
  0x10   : > { %s178_s17 = scalar_lea.vmem %s472_s0, %s360_s13  ;;  %s187_s20 = scalar_lea.vmem %s473_s1, %s367_s14 }
  0x11   : > { %v201_v10 = vld [vmem:[%s178_s17] sm:$0xff]  ;;  %v198_v16 = vld [vmem:[%s187_s20 + $0x8] sm:$0xff]  ;;  %v199_v23 = vld [vmem:[%s187_s20 + $0x10] sm:$0xff]  ;;  %s196_s23 = scalar_lea.vmem %s474_s2, %s367_s14 }
  0x12   : > { %v206_v11 = vrot.slane %v201_v10, %v205_v2  ;;  %v210_v12 = vrot.slane %v201_v10, %v209_v3  ;;  %v214_v13 = vrot.slane %v201_v10, %v213_v4  ;;  %v218_v14 = vrot.slane %v201_v10, %v217_v5  ;;  %v197_v15 = vld [vmem:[%s187_s20] sm:$0xff]  ;;  %v200_v24 = vld [vmem:[%s187_s20 + $0x18] sm:$0xff] }
  0x13   : > { %v222_v17 = vrot.slane %v201_v10, %v221_v6  ;;  %v226_v18 = vrot.slane %v201_v10, %v225_v7  ;;  %v230_v19 = vrot.slane %v201_v10, %v229_v8  ;;  %v234_v20 = vrot.slane %v201_v10, %v233_v9 }
  0x14   : > { %v235_v21 = vcombine.low %v206_v11, %v210_v12  ;;  %v236_v22 = vcombine.low %v214_v13, %v218_v14 }
  0x15   : > { %v237_v25 = vcombine.low %v222_v17, %v226_v18  ;;  %v238_v26 = vcombine.low %v230_v19, %v234_v20 }
  0x16   : > { %v243_v27 = vmul.f32 %v235_v21, %v197_v15  ;;  %v244_v28 = vmul.f32 %v236_v22, %v198_v16 }
  0x17   : > { %v245_v29 = vmul.f32 %v237_v25, %v199_v23  ;;  %v246_v30 = vmul.f32 %v238_v26, %v200_v24 }
  0x18   : > { %247 = vst [vmem:[%s196_s23] sm:$0xff] %v243_v27  ;;  %248 = vst [vmem:[%s196_s23 + $0x8] sm:$0xff] %v244_v28 }
  0x19   : > { %249 = vst [vmem:[%s196_s23 + $0x10] sm:$0xff] %v245_v29  ;;  %250 = vst [vmem:[%s196_s23 + $0x18] sm:$0xff] %v246_v30 }
  0x1a PF: > { %s12_s11 = sadd.s32 1, %s415_s11   ;;  %s475_s9 = smov %s411_s10 }
  0x1b   : > { %p9_p5 = scmp.ge.s32.totalorder %s12_s11, 4   ;;  %s476_s10 = smov %s478_s12 }
  0x1d   :  { %11 = sbr.rel (!%p9_p5) target bundleno = 2 (0x2), region = 61 }

// kernel: ha_forward.2
= control target key start
LH: loop header
LB: loop body
LE: loop exit
PB: predicated region body
PF: predicated region fallthrough
CT: control target
= control target key end

     0   :  { %8 = vsyncpa [#allocation3], 0  ;;  %s1091_s0 = inlined_call_operand.hbm [shape: f32[2,32,32], index: 0, kind: input, shape index: {}]   ;;  %s1092_s1 = inlined_call_operand.hbm [shape: f32[32,32], index: 1, kind: input, shape index: {}, may-alias: {1,2}]   ;;  %s1093_s2 = inlined_call_operand.hbm [shape: f32[32,32], index: 2, kind: input, shape index: {}, may-alias: {1,2}]   ;;  %s1094_s3 = inlined_call_operand.vmem [shape: f32[2,32,32], index: 3, kind: output, shape index: {}]  }
   0x1   :  { %10 = vsyncpa [#allocation3 + $0x1], 0 }
   0x2   :  { %11 = vsyncpa [#allocation5], 0  ;;  %s871_s12 = smov 0   ;;  %s873_s13 = smov 0  }
   0x3   :  { %s875_s14 = smov 0   ;;  %s877_s15 = smov 0  }
   0x4 LB: > { %s890_s16 = sadd.s32 4294967295, %s844_s15   ;;  %p37_p0 = scmp.ne.s32.totalorder %s836_s13, %s832_s12  ;;  %s844_s15 = sphi %s877_s15, %s1109_s15   ;;  %s840_s14 = sphi %s875_s14, %s1108_s14   ;;  %s836_s13 = sphi %s873_s13, %s1107_s13   ;;  %s832_s12 = sphi %s871_s12, %s1106_s12  }
   0x5   : > { %p1095_p1 = scmp.eq.s32.totalorder %s890_s16, 0  ;;  %p567_p2 = scmp.ge.s32.totalorder %s844_s15, 1 }
   0x6   : > { %p116_p3 = scmp.lt.s32.totalorder %s844_s15, 3  ;;  %s846_s19 = smov [#allocation4]  }
   0x7   : > { %p898_p4 = por %p1095_p1, %p37_p0  ;;  %s128_s20 = sshll.u32 %s846_s19, 4  ;;  %s129_s20 = int_to_ptr.vmem [resolvable:$true] %s128_s20 }
   0x8   : > { %p902_p5 = pnand %p567_p2, %p116_p3  ;;  %s847_s22 = smov [#allocation6]  }
   0x9   : > { %s1098_s17 = scalar_select %p898_p4, 1, 0 }
   0xa   : > { %s1099_s18 = scalar_select %p902_p5, 1, 0 }
   0xb   : > { %p666_p6 = pneg %p902_p5  ;;  %s141_s23 = sshll.u32 %s847_s22, 4  ;;  %s914_s23 = int_to_ptr.vmem [resolvable:$true] %s141_s23 }
   0xc   : > { %s720_s26 = scalar_lea.hbm %s1092_s1, 512 }
   0xd   : > { %p910_p7 = pnand %p666_p6, %p1095_p1  ;;  %p721_p8 = scmp.ne.s32.totalorder %s1092_s1, %s720_s26 }
   0xe   : > { %p727_p12 = scmp.lt.u32.totalorder %s720_s26, %s1092_s1 }
   0xf   : > { %p722_p9 = pneg %p910_p7 }
  0x11   : > { %p723_p10 = pnand %p722_p9, %p721_p8 }
  0x13   : > { %p724_p11 = pneg %p723_p10 }
  0x15   : > { %p729_p13 = pnand %p727_p12, %p724_p11 }
  0x17   : > { %732 = shalt.err (!%p729_p13)
}
  0x18   : > { %s733_s4 = scalar_lea.vmem %s129_s20, 512  ;;  %p741_p6 = scmp.lt.s32.totalorder %s129_s20, %s129_s20 }
  0x19   : > { %p734_p0 = scmp.ne.s32.totalorder %s129_s20, %s733_s4  ;;  %p742_p1 = scmp.lt.s32.totalorder %s733_s4, %s733_s4 }
  0x1b   : > { %p736_p2 = pnand %p734_p0, %p722_p9  ;;  %p743_p4 = por %p742_p1, %p741_p6 }
  0x1d   : > { %p737_p3 = pneg %p736_p2 }
  0x1f   : > { %p744_p5 = pnand %p743_p4, %p737_p3 }
  0x21   : > { %747 = shalt.err (!%p744_p5)
}
  0x22   : > { %s848_s5 = smov 128   ;;  %s849_s6 = smov 8  }
  0x23   : > { %669 = dma.hbm_to_vmem [thread:$0]  (!%p910_p7), %s1092_s1, 512, %s129_s20, [#allocation5], %s848_s5, %s848_s5, %s849_s6  }
  0x24   : > { %s748_s11 = scalar_lea.hbm %s1093_s2, 512 }
  0x25   : > { %p749_p1 = scmp.ne.s32.totalorder %s1093_s2, %s748_s11  ;;  %p755_p8 = scmp.lt.u32.totalorder %s748_s11, %s1093_s2 }
  0x27   : > { %p751_p4 = pnand %p749_p1, %p722_p9 }
  0x29   : > { %p752_p5 = pneg %p751_p4 }
  0x2b   : > { %p757_p10 = pnand %p755_p8, %p752_p5 }
  0x2d   : > { %760 = shalt.err (!%p757_p10)
}
  0x2e   : > { %s761_s20 = scalar_lea.vmem %s914_s23, 512  ;;  %p769_p0 = scmp.lt.s32.totalorder %s914_s23, %s914_s23 }
  0x2f   : > { %p762_p11 = scmp.ne.s32.totalorder %s914_s23, %s761_s20  ;;  %p770_p2 = scmp.lt.s32.totalorder %s761_s20, %s761_s20 }
  0x31   : > { %p764_p12 = pnand %p762_p11, %p722_p9  ;;  %p771_p3 = por %p770_p2, %p769_p0 }
  0x33   : > { %p765_p13 = pneg %p764_p12 }
  0x35   : > { %p772_p6 = pnand %p771_p3, %p765_p13 }
  0x37   : > { %775 = shalt.err (!%p772_p6)
}
  0x38   : > { %672 = dma.hbm_to_vmem [thread:$0]  (!%p910_p7), %s1093_s2, 512, %s914_s23, [#allocation5], %s848_s5, %s848_s5, %s849_s6  }
  0x39   : > { %s970_s27 = sadd.s32 1, %s844_s15   ;;  %s24_s21 = sadd.s32 1, %s840_s14 }
  0x3a   : > { %s21_s28 = ssub.s32 %s844_s15, %s970_s27  ;;  %p31_p9 = scmp.ne.s32.totalorder %s840_s14, %s836_s13 }
  0x3b   : > { %p22_p1 = scmp.eq.s32.totalorder %s21_s28, 0  ;;  %p32_p4 = scmp.eq.s32.totalorder %s844_s15, 0 }
  0x3c   : > { %p679_p5 = scmp.lt.s32.totalorder %s844_s15, 2  ;;  %s155_s29 = sand.u32 1, %s840_s14  }
  0x3d   : > { %s981_s30 = scalar_select %p22_p1, %s840_s14, %s24_s21  }
  0x3e   : > { %p33_p8 = por %p32_p4, %p31_p9  ;;  %s571_s4 = sshll.u32 %s155_s29, 5 }
  0x3f   : > { %s590_s7 = sshll.u32 %s844_s15, 9  ;;  %s159_s23 = scalar_lea.vmem [#allocation2], %s571_s4 }
  0x40   : > { %s987_s10 = scalar_lea.hbm %s1091_s0, %s590_s7  ;;  %s166_s11 = sshll.u32 %s159_s23, 4  ;;  %s993_s11 = int_to_ptr.vmem [resolvable:$true] %s166_s11 }
  0x41   : > { %p989_p7 = pnand %p679_p5, %p33_p8  ;;  %s995_s15 = scalar_lea.sflag [#allocation3], %s155_s29 }
  0x42   : > { %s776_s19 = scalar_lea.hbm %s987_s10, 512  ;;  %s781_s20 = scalar_lea.hbm %s1091_s0, 1024 }
  0x43   : > { %p777_p10 = scmp.ne.s32.totalorder %s987_s10, %s776_s19  ;;  %p778_p11 = pneg %p989_p7 }
  0x44   : > { %p782_p0 = scmp.lt.u32.totalorder %s987_s10, %s1091_s0  ;;  %p783_p2 = scmp.lt.u32.totalorder %s781_s20, %s776_s19 }
  0x45   : > { %p779_p12 = pnand %p778_p11, %p777_p10  ;;  %p785_p6 = scmp.lt.u32.totalorder %s776_s19, %s987_s10 }
  0x46   : > { %p784_p3 = por %p783_p2, %p782_p0 }
  0x47   : > { %p780_p13 = pneg %p779_p12 }
  0x48   : > { %p786_p9 = por %p785_p6, %p784_p3 }
  0x4a   : > { %p787_p1 = pnand %p786_p9, %p780_p13 }
  0x4c   : > { %790 = shalt.err (!%p787_p1)
}
  0x4d   : > { %s791_s21 = scalar_lea.vmem %s993_s11, 512  ;;  %s850_s28 = smov [#allocation2]  }
  0x4e   : > { %p792_p4 = scmp.ne.s32.totalorder %s993_s11, %s791_s21  ;;  %s796_s29 = sshll.u32 %s850_s28, 4  ;;  %s797_s29 = int_to_ptr.vmem [resolvable:$false] %s796_s29 }
  0x4f   : > { %s798_s4 = scalar_lea.vmem %s797_s29, 1024  ;;  %p799_p10 = scmp.lt.s32.totalorder %s993_s11, %s797_s29 }
  0x50   : > { %p794_p5 = pnand %p792_p4, %p778_p11  ;;  %p800_p12 = scmp.lt.s32.totalorder %s798_s4, %s791_s21 }
  0x52   : > { %p795_p8 = pneg %p794_p5  ;;  %p801_p0 = por %p800_p12, %p799_p10 }
  0x54   : > { %p802_p2 = pnand %p801_p0, %p795_p8 }
  0x56   : > { %805 = shalt.err (!%p802_p2)
}
  0x57   : > { %676 = dma.hbm_to_vmem [thread:$0]  (!%p989_p7), %s987_s10, 512, %s993_s11, %s995_s15, %s848_s5, %s848_s5, %s849_s6  }
  0x58   : > { %p1102_p11 = scmp.ne.s32.totalorder %s1099_s18, 0 }
  0x59   : > { %s180_s7 = sand.u32 (!%p1102_p11), 1, %s836_s13   ;;  %p1103_p13 = scmp.ne.s32.totalorder (!%p1102_p11), %s1098_s17, 0 }
  0x5a   : > { %178 = sbr.rel (%p1102_p11) target bundleno = 778 (0x30a), region = 32  ;;  %s575_s8 = sshll.u32 (!%p1102_p11), %s180_s7, 5 }
  0x5b   : > { %s181_s9 = scalar_lea.sflag (!%p1102_p11), [#allocation3], %s180_s7  ;;  %s184_s23 = scalar_lea.vmem (!%p1102_p11), [#allocation2], %s575_s8 }
  0x61   : > { %823 = dma.done.wait (%p1103_p13), %s181_s9, 512  }
  0x62   : > { %825 = vsyncadd (%p1103_p13), %s181_s9, 4294966784  ;;  %p1104_p3 = scmp.eq.s32.totalorder %s890_s16, 0 }
  0x64   : > { %827 = dma.done.wait (%p1104_p3), [#allocation5], 1024   ;;  %p1105_p6 = pmov %p1104_p3 }
  0x65   : > { %vm228_vm0 = vcmask 261120   ;;  %v1037_v0 = vld [vmem:[%s184_s23] sm:$0xff]  ;;  %v1039_v1 = vld [vmem:[%s184_s23 + $0x8] sm:$0xff]  ;;  %v1041_v2 = vld [vmem:[%s184_s23 + $0x10] sm:$0xff]  ;;  %p215_p7 = scmp.lt.s32.totalorder %s890_s16, 1 }
  0x66   : > { %829 = vsyncadd (%p1105_p6), [#allocation5], 4294966272  ;;  %v636_v3 = vpack.c.bf16 %v1039_v1, %v1037_v0  ;;  %v1045_v4 = vld [vmem:[%s184_s23 + $0x18] sm:$0xff]  ;;  %v224_v5 = vld [vmem:[#allocation4] sm:$0xff] }
  0x67   : > { %v640_v6 = vpack.c.bf16 %v1045_v4, %v1041_v2  ;;  %616 = vmatprep.mubr.msk.f32.mxu0 %vm228_vm0, %v224_v5  ;;  %v326_v7 = vld [vmem:[#allocation6] sm:$0xff]  ;;  %v327_v8 = vld [vmem:[#allocation6 + $0x8] sm:$0xff]  ;;  %v328_v9 = vld [vmem:[#allocation6 + $0x10] sm:$0xff]  ;;  %s1111_s16 = smov (!%p215_p7, %s890_s16), 1 }
  0x68   : > { %637 = vmatprep.subr.bf16.mxu0 %v636_v3  ;;  %v329_v10 = vld [vmem:[#allocation6 + $0x18] sm:$0xff]  ;;  %v644_v11 = vpack.c.bf16 %v327_v8, %v326_v7  ;;  %v225_v13 = vld [vmem:[#allocation4 + $0x8] sm:$0xff]  ;;  %v226_v14 = vld [vmem:[#allocation4 + $0x10] sm:$0xff]  ;;  %s591_s5 = sshll.u32 %s1111_s16, 5 }
  0x69   : > { %639 = vmatpush3.bf16.msra.mxu0 %v636_v3  ;;  %v648_v12 = vpack.c.bf16 %v329_v10, %v328_v9  ;;  %v227_v15 = vld [vmem:[#allocation4 + $0x18] sm:$0xff]  ;;  %s219_s11 = scalar_lea.vmem %s1094_s3, %s591_s5 }
  0x6a   : > { %641 = vmatprep.subr.bf16.mxu0 %v640_v6  ;;  %645 = vmatprep.subr.bf16.mxu1 %v644_v11 }
  0x6b   : > { %647 = vmatpush3.bf16.msra.mxu1 %v644_v11 }
  0x6c   : > { %649 = vmatprep.subr.bf16.mxu1 %v648_v12 }
  0x6d   : > { %643 = vmatpush3.bf16.msra.mxu0 %v640_v6 }
  0x6f   : > { %651 = vmatpush3.bf16.msra.mxu1 %v648_v12 }
  0x70   : > { %617 = vmatmul.mubr.msk.f32.vlgmr.msra.gmra.mrb[0].mxu0 %vm228_vm0, %v225_v13 }
  0x71   : > { %619 = vmatprep.mubr.msk.f32.mxu0 %vm228_vm0, %v226_v14 }
  0x74   : > { %620 = vmatmul.mubr.msk.f32.gmra.mrb[2].mxu0 %vm228_vm0, %v227_v15 }
 0x143   : > { %v618_v16 = vpop.f32.mrb[0].mxu0 }
 0x144   : > { %v307_v17 = vpop.f32.mrb[1].mxu0 }
 0x145   : > { %630 = vmatprep.mubr.msk.f32.mxu1 %vm228_vm0, %v307_v17 }
 0x146   : > { %631 = vmatmul.mubr.msk.f32.vlgmr.msra.gmra.mrb[0].mxu1 %vm228_vm0, %v618_v16 }
 0x147   : > { %v621_v18 = vpop.f32.mrb[2].mxu0 }
 0x148   : > { %v317_v19 = vpop.f32.mrb[3].mxu0 }
 0x149   : > { %633 = vmatprep.mubr.msk.f32.mxu1 %vm228_vm0, %v317_v19 }
 0x14a   : > { %634 = vmatmul.mubr.msk.f32.gmra.mrb[2].mxu1 %vm228_vm0, %v621_v18 }
 0x219   : > { %v632_v20 = vpop.f32.mrb[0].mxu1 }
 0x21a   : > { %v445_v21 = vsel %vm228_vm0, %v632_v20, -inf  ;;  %v408_v22 = vpop.f32.mrb[1].mxu1  ;;  %v428_v23 = vsel %vm228_vm0, %v632_v20, inf }
 0x21b   : > { %v444_v24 = vsel %vm228_vm0, %v408_v22, -inf  ;;  %v427_v25 = vsel %vm228_vm0, %v408_v22, inf }
 0x21c   : > { %v431_v26 = vmin.f32 %v427_v25, %v428_v23  ;;  %v448_v27 = vmax.f32 %v444_v24, %v445_v21 }
 0x21d   : > { %v635_v28 = vpop.f32.mrb[2].mxu1 }
 0x21e   : > { %v447_v29 = vsel %vm228_vm0, %v635_v28, -inf  ;;  %v418_v30 = vpop.f32.mrb[3].mxu1  ;;  %v430_v31 = vsel %vm228_vm0, %v635_v28, inf }
 0x21f   : > { %v429_v32 = vsel %vm228_vm0, %v418_v30, inf  ;;  %v446_v33 = vsel %vm228_vm0, %v418_v30, -inf }
 0x220   : > { %v449_v34 = vmax.f32 %v446_v33, %v447_v29  ;;  %v432_v35 = vmin.f32 %v429_v32, %v430_v31 }
 0x222   : > { %v433_v36 = vmin.f32 %v431_v26, %v432_v35  ;;  %v450_v37 = vmax.f32 %v448_v27, %v449_v34 }
 0x224   : > { %434 = vmin.xlane.f32.xlu0 %v433_v36 }
 0x228   : > { %451 = vmax.xlane.f32.xlu0 %v450_v37 }
 0x2b1   : > { %v435_v38 = vpop.xlane.xlu0 %434 }
 0x2b2   : > { %v436_v39 = vrot.slane %v435_v38, 4 }
 0x2b4   : > { %v437_v40 = vmin.f32 %v435_v38, %v436_v39 }
 0x2b5   : > { %v452_v41 = vpop.xlane.xlu0 %451 }
 0x2b6   : > { %v438_v42 = vrot.slane %v437_v40, 2  ;;  %v453_v43 = vrot.slane %v452_v41, 4 }
 0x2b8   : > { %v454_v44 = vmax.f32 %v452_v41, %v453_v43  ;;  %v439_v45 = vmin.f32 %v437_v40, %v438_v42 }
 0x2ba   : > { %v455_v46 = vrot.slane %v454_v44, 2  ;;  %v440_v47 = vrot.slane %v439_v45, 1 }
 0x2bc   : > { %v456_v48 = vmax.f32 %v454_v44, %v455_v46  ;;  %v441_v49 = vmin.f32 %v439_v45, %v440_v47 }
 0x2be   : > { %652 = vpush %v441_v49  ;;  %v457_v50 = vrot.slane %v456_v48, 1 }
 0x2c0   : > { %v458_v51 = vmax.f32 %v456_v48, %v457_v50 }
 0x2c2   : > { %654 = vpush %v458_v51 }
 0x2ef   : > { %s653_s17 = spop %652 }
 0x2f0   : > { %v443_v52 = vstv %s653_s17 }
 0x2f1   : > { %v461_v56 = vsub.f32 %v408_v22, %v443_v52  ;;  %v462_v57 = vsub.f32 %v632_v20, %v443_v52  ;;  %v463_v58 = vsub.f32 %v418_v30, %v443_v52  ;;  %v464_v59 = vsub.f32 %v635_v28, %v443_v52 }
 0x2f3   : > { %s655_s18 = spop %654 }
 0x2f4   : > { %v460_v53 = vstv %s655_s18 }
 0x2f5   : > { %v465_v54 = vsub.f32 %v460_v53, %v443_v52 }
 0x2f7   : > { %v466_v55 = vadd.f32 1e-08, %v465_v54 }
 0x2f9   : > { %718 = vrcp.f32 %v466_v55 }
 0x303   : > { %v719_v60 = vpop.eup %718 }
 0x304   : > { %v468_v61 = vmul.f32 %v719_v60, %v461_v56  ;;  %v469_v62 = vmul.f32 %v719_v60, %v462_v57  ;;  %v470_v63 = vmul.f32 %v719_v60, %v463_v58  ;;  %v471_v3 = vmul.f32 %v719_v60, %v464_v59 }
 0x306   : > { %v472_v5 = vmax.f32 %v468_v61, %v1037_v0  ;;  %v473_v6 = vmax.f32 %v469_v62, %v1039_v1  ;;  %v474_v7 = vmax.f32 %v470_v63, %v1041_v2  ;;  %v475_v8 = vmax.f32 %v471_v3, %v1045_v4 }
 0x308   : > { %476 = vst.msk [vmem:[%s219_s11] sm:$0xff] %vm228_vm0, %v472_v5  ;;  %477 = vst.msk [vmem:[%s219_s11 + $0x8] sm:$0xff] %vm228_vm0, %v473_v6 }
 0x309   : > { %478 = vst.msk [vmem:[%s219_s11 + $0x10] sm:$0xff] %vm228_vm0, %v474_v7  ;;  %479 = vst.msk [vmem:[%s219_s11 + $0x18] sm:$0xff] %vm228_vm0, %v475_v8 }
 0x30a PF: > { %p14_p9 = scmp.ge.s32.totalorder %s970_s27, 4   ;;  %s1106_s12 = smov %s836_s13 }
 0x30b   : > { %s1107_s13 = smov %s840_s14  ;;  %s1108_s14 = smov %s981_s30 }
 0x30c   : > { %s1109_s15 = smov %s970_s27  ;;  %16 = sbr.rel (!%p14_p9) target bundleno = 4 (0x4), region = 80 }
 0x313   :  { %501 = vsyncpa [#allocation3], 1 }
 0x314   :  { %503 = vsyncpa [#allocation3 + $0x1], 1 }
 0x315   :  { %504 = vsyncpa [#allocation5], 1 }

</bundles_post_ra>
